<compile_context>
chip_gen: v6e
topology: v6e:2x2x1
jax: 0.10.0
libtpu: 0.0.40
codegen_flags: <defaults>
</compile_context>

<pallas_src>
import jax
import jax.numpy as jnp
from jax.experimental import pallas as pl
from jax.experimental.pallas import tpu as pltpu

NVOCAB = 3433           # vocabulary size hard-coded in the module
TV = 256                # vocab tile: matches 256-wide MXU (v6e/v7x), 2x128 on v5e
VPAD = 3584             # 14 * 256, MXU/lane-aligned padded vocab
NEG_PAD = -1e30         # bias on padded vocab columns (never wins the row max)
ROW_TILE_MAX = 256      # row tile cap: (256,3584) logits never hit HBM anyway
NEG_INIT = -3.0e38      # running-max init (finite, avoids inf-inf NaN paths)


def _round_up(x, m):
    return (x + m - 1) // m * m


# ----------------------------------------------------------------------------
# Kernel 1 (training): fused caption-head matmul + masked CE (online logsumexp)
#   per row:  loss = (logsumexp(x @ W + b) - (x @ W + b)[target]) * (target!=0)
#   grid = (row_tiles [parallel], vocab_tiles [arbitrary, sequential])
# ----------------------------------------------------------------------------
def _fused_caption_ce_kernel(x_ref, w_ref, b_ref, tgt_ref, loss_ref,
                             m_sc, s_sc, t_sc):
    j = pl.program_id(1)

    @pl.when(j == 0)
    def _():
        m_sc[...] = jnp.full_like(m_sc, NEG_INIT)   # running max
        s_sc[...] = jnp.zeros_like(s_sc)            # running exp-sum
        t_sc[...] = jnp.zeros_like(t_sc)            # target logit

    # (tm, tv) logits tile on the MXU; bf16 inputs, f32 accumulation + f32 bias.
    logits = (jnp.dot(x_ref[...], w_ref[...],
                      preferred_element_type=jnp.float32)
              + b_ref[...])

    tgt = tgt_ref[...]                              # (tm, 1) int32

    # online logsumexp update over this vocab tile
    m_prev = m_sc[...]
    m_new = jnp.maximum(m_prev, jnp.max(logits, axis=-1, keepdims=True))
    alpha = jnp.exp(m_prev - m_new)
    p = jnp.exp(logits - m_new)
    s_sc[...] = alpha * s_sc[...] + jnp.sum(p, axis=-1, keepdims=True)
    m_sc[...] = m_new

    # pick this tile's contribution to the target logit (targets < NVOCAB, so
    # padded vocab columns are never selected)
    col0 = j * logits.shape[-1]
    vocab_ids = col0 + jax.lax.broadcasted_iota(jnp.int32, logits.shape, 1)
    t_sc[...] += jnp.sum(jnp.where(vocab_ids == tgt, logits, jnp.float32(0.0)),
                         axis=-1, keepdims=True)

    @pl.when(j == pl.num_programs(1) - 1)
    def _():
        lse = m_sc[...] + jnp.log(s_sc[...])
        mask = (tgt != 0).astype(jnp.float32)       # ignore_index = 0
        loss_ref[...] = (lse - t_sc[...]) * mask


def fused_caption_ce_loss(x, w, b, targets, *, tm, tv=TV):
    """Per-row masked CE, logits never materialized in HBM.

    x:       [N, Hp]   bf16  (N multiple of tm, Hp multiple of 128)
    w:       [Hp, V]   bf16  (V multiple of tv)
    b:       [1, V]    f32   (NEG_PAD on padded vocab columns)
    targets: [N, 1]    int32 (0 = ignore; padded rows carry 0)
    returns: [N, 1]    f32   masked per-row loss
    """
    n, h = x.shape
    v = w.shape[1]
    assert n % tm == 0 and h % 128 == 0 and v % tv == 0
    return pl.pallas_call(
        _fused_caption_ce_kernel,
        out_shape=jax.ShapeDtypeStruct((n, 1), jnp.float32),
        grid_spec=pltpu.PrefetchScalarGridSpec(
            num_scalar_prefetch=0,
            grid=(n // tm, v // tv),
            in_specs=[
                pl.BlockSpec((tm, h), lambda i, j: (i, 0)),   # x rows, resident over j
                pl.BlockSpec((h, tv), lambda i, j: (0, j)),   # W vocab tile
                pl.BlockSpec((1, tv), lambda i, j: (0, j)),   # bias vocab tile
                pl.BlockSpec((tm, 1), lambda i, j: (i, 0)),   # targets
            ],
            out_specs=pl.BlockSpec((tm, 1), lambda i, j: (i, 0)),
            scratch_shapes=[
                pltpu.VMEM((tm, 1), jnp.float32),   # running max
                pltpu.VMEM((tm, 1), jnp.float32),   # running exp-sum
                pltpu.VMEM((tm, 1), jnp.float32),   # target logit
            ],
        ),
        compiler_params=pltpu.CompilerParams(
            dimension_semantics=("parallel", "arbitrary")),
    )(x, w, b, targets)


# ----------------------------------------------------------------------------
# Kernel 2 (eval): caption-head matmul that materializes logits
#   logits[N, V] = x[N, Hp] @ W[Hp, V] + b[1, V]      (row + vocab tiled)
# ----------------------------------------------------------------------------
def _caption_head_kernel(x_ref, w_ref, b_ref, o_ref):
    o_ref[...] = (jnp.dot(x_ref[...], w_ref[...],
                          preferred_element_type=jnp.float32)
                  + b_ref[...])


def caption_head(x, w, b, *, tm, tv=TV):
    n, h = x.shape
    v = w.shape[1]
    assert n % tm == 0 and h % 128 == 0 and v % tv == 0
    return pl.pallas_call(
        _caption_head_kernel,
        out_shape=jax.ShapeDtypeStruct((n, v), jnp.float32),
        grid_spec=pltpu.PrefetchScalarGridSpec(
            num_scalar_prefetch=0,
            grid=(n // tm, v // tv),
            in_specs=[
                pl.BlockSpec((tm, h), lambda i, j: (i, 0)),
                pl.BlockSpec((h, tv), lambda i, j: (0, j)),
                pl.BlockSpec((1, tv), lambda i, j: (0, j)),
            ],
            out_specs=pl.BlockSpec((tm, tv), lambda i, j: (i, j)),
        ),
        compiler_params=pltpu.CompilerParams(
            dimension_semantics=("parallel", "parallel")),
    )(x, w, b)


# ----------------------------------------------------------------------------
# Module-equivalent forward
# ----------------------------------------------------------------------------
def init_params(key, hidden):
    hp = _round_up(hidden, 128)                     # keep MXU K-dim aligned
    kw, kb = jax.random.split(key)
    w = (jax.random.normal(kw, (hidden, NVOCAB), jnp.float32)
         * (1.0 / jnp.sqrt(hidden)))
    bias = jax.random.normal(kb, (NVOCAB,), jnp.float32) * 0.01
    w_pad = jnp.pad(w, ((0, hp - hidden), (0, VPAD - NVOCAB)))
    b_pad = jnp.pad(bias, (0, VPAD - NVOCAB), constant_values=NEG_PAD)
    return {"w": w_pad.astype(jnp.bfloat16),        # bf16 weights (HBM/MXU win)
            "b": b_pad.reshape(1, VPAD)}            # f32 bias


def _prep_rows(feats, hp):
    """Flatten tokens, pad hidden to hp and rows to a tile multiple; -> bf16."""
    b_, t_, h_ = feats.shape
    n = b_ * t_
    x = feats.reshape(n, h_).astype(jnp.float32)
    x = jnp.pad(x, ((0, 0), (0, hp - h_)))
    n_pad = _round_up(n, 16)                        # bf16 sublane packing
    tm = min(ROW_TILE_MAX, n_pad)
    n_pad = _round_up(n_pad, tm)
    x = jnp.pad(x, ((0, n_pad - n), (0, 0))).astype(jnp.bfloat16)
    return x, n, n_pad, tm


def default_only_captioner_forward(input_dict, params, training=True):
    # --- backbone stand-in: linear caption head over per-token features ---
    # TODO(synk): the real backbone is config-driven (build_model); only a
    #             stand-in linear caption decoder head is implemented here.
    feats = input_dict["point_features"]            # [B, T, H]
    b_, t_, _ = feats.shape
    hp = params["w"].shape[0]
    x_pad, n, n_pad, tm = _prep_rows(feats, hp)

    if training:
        # (no 'scst' key in this stand-in backbone -> token-level CE branch)
        tgt = input_dict["caption_target"].reshape(n).astype(jnp.int32)
        tgt_pad = jnp.pad(tgt, (0, n_pad - n)).reshape(n_pad, 1)  # pads -> 0 (ignored)
        per_row = fused_caption_ce_loss(x_pad, params["w"], params["b"],
                                        tgt_pad, tm=tm)           # [n_pad, 1]
        cnt = jnp.sum((tgt != 0).astype(jnp.float32))
        loss = jnp.sum(per_row) / (cnt + 1e-6)
        return {"loss": loss}

    # eval path: end_points must carry the caption logits -> materialize them
    logits_pad = caption_head(x_pad, params["w"], params["b"], tm=tm)
    logits = logits_pad[:n, :NVOCAB].reshape(b_, t_, NVOCAB)
    end_points = {"caption_logits": (logits,),
                  "caption_target": input_dict["caption_target"]}
    end_points.update(input_dict)
    return end_points


# ----------------------------------------------------------------------------
# Pure-JAX reference for verification (same bf16 matmul inputs, f32 math)
# ----------------------------------------------------------------------------
def reference_logits(feats, params):
    b_, t_, h_ = feats.shape
    x = feats.reshape(b_ * t_, h_).astype(jnp.bfloat16).astype(jnp.float32)
    w = params["w"][:h_, :NVOCAB].astype(jnp.float32)
    bias = params["b"][0, :NVOCAB]
    return x @ w + bias


def reference_loss(feats, targets, params):
    logits = reference_logits(feats, params)
    logp = jax.nn.log_softmax(logits, axis=-1)
    t = targets.reshape(-1)
    per_word = -jnp.take_along_axis(logp, t[:, None], axis=-1)[:, 0]
    mask = (t != 0).astype(jnp.float32)
    return jnp.sum(per_word * mask) / (jnp.sum(mask) + 1e-6)


if __name__ == "__main__":
    B, T, H = 2, 8, 32
    key = jax.random.PRNGKey(0)
    k_feat, k_tgt, k_params, k_pc = jax.random.split(key, 4)

    feats = jax.random.normal(k_feat, (B, T, H), jnp.float32)
    targets = jax.random.randint(k_tgt, (B, T), 0, NVOCAB, dtype=jnp.int32)
    targets = targets.at[:, -2:].set(0)             # a few ignore_index tokens

    params = init_params(k_params, H)

    input_dict = {
        # fields the real module would forward to the backbone (unused by the
        # stand-in head, kept for interface fidelity)
        "point_clouds": jax.random.normal(k_pc, (B, 64, 3), jnp.float32),
        "offset": jnp.array([64, 128], jnp.int32),
        # stand-in backbone token features + ground-truth caption tokens
        "point_features": feats,
        "caption_target": targets,
    }

    # training path: fused matmul + masked CE (logits never hit HBM)
    out = default_only_captioner_forward(input_dict, params, training=True)
    loss = jax.block_until_ready(out["loss"])
    ref = reference_loss(feats, targets, params)
    assert jnp.allclose(loss, ref, rtol=1e-3, atol=1e-3), (loss, ref)

    # eval path: tiled caption head that materializes logits
    end_points = default_only_captioner_forward(input_dict, params,
                                                training=False)
    logits = jax.block_until_ready(end_points["caption_logits"][0])
    assert logits.shape == (B, T, NVOCAB)
    ref_lg = reference_logits(feats, params)
    assert jnp.allclose(logits.reshape(-1, NVOCAB), ref_lg,
                        rtol=1e-3, atol=1e-3)

    print("KERNEL_OK")
</pallas_src>

<mosaic_0001>
module attributes {stable_mosaic.version = 11 : i64} {
  func.func @_fused_caption_ce_kernel(%arg0: i32, %arg1: i32, %arg2: memref<16x128xbf16, #tpu.memory_space<vmem>>, %arg3: memref<128x256xbf16, #tpu.memory_space<vmem>>, %arg4: memref<1x256xf32, #tpu.memory_space<vmem>>, %arg5: memref<16x1xi32, #tpu.memory_space<vmem>>, %arg6: memref<16x1xf32, #tpu.memory_space<vmem>>, %arg7: memref<16x1xf32, #tpu.memory_space<vmem>>, %arg8: memref<16x1xf32, #tpu.memory_space<vmem>>, %arg9: memref<16x1xf32, #tpu.memory_space<vmem>>) attributes {dimension_semantics = [#tpu.dimension_semantics<parallel>, #tpu.dimension_semantics<arbitrary>], iteration_bounds = array<i64: 1, 14>, scalar_prefetch = 0 : i64, scratch_operands = 3 : i64, tpu.core_type = #tpu.core_type<tc>, window_params = [{transform_indices = @transform_0, window_bounds = array<i64: 16, 128>}, {transform_indices = @transform_1, window_bounds = array<i64: 128, 256>}, {transform_indices = @transform_2, window_bounds = array<i64: 1, 256>}, {transform_indices = @transform_3, window_bounds = array<i64: 16, 1>}, {transform_indices = @transform_4, window_bounds = array<i64: 16, 1>}]} {
    %c0_i32 = arith.constant 0 : i32
    %0 = arith.cmpi eq, %arg1, %c0_i32 : i32
    %1 = arith.extui %0 : i1 to i32
    %c0_i32_0 = arith.constant 0 : i32
    %2 = arith.cmpi ne, %1, %c0_i32_0 : i32
    scf.if %2 {
      %cst_25 = arith.constant -3.000000e+38 : f32
      %42 = vector.broadcast %cst_25 : f32 to vector<16x1xf32>
      %c0_26 = arith.constant 0 : index
      %c0_27 = arith.constant 0 : index
      %43 = vector.load %arg7[%c0_26, %c0_27] : memref<16x1xf32, #tpu.memory_space<vmem>>, vector<16x1xf32>
      tpu.vector_store %arg7[%c0_26, %c0_27], %42 {strides = array<i32>} : memref<16x1xf32, #tpu.memory_space<vmem>>, vector<16x1xf32>,
      %cst_28 = arith.constant 0.000000e+00 : f32
      %44 = vector.broadcast %cst_28 : f32 to vector<16x1xf32>
      %c0_29 = arith.constant 0 : index
      %c0_30 = arith.constant 0 : index
      %45 = vector.load %arg8[%c0_29, %c0_30] : memref<16x1xf32, #tpu.memory_space<vmem>>, vector<16x1xf32>
      tpu.vector_store %arg8[%c0_29, %c0_30], %44 {strides = array<i32>} : memref<16x1xf32, #tpu.memory_space<vmem>>, vector<16x1xf32>,
      %cst_31 = arith.constant 0.000000e+00 : f32
      %46 = vector.broadcast %cst_31 : f32 to vector<16x1xf32>
      %c0_32 = arith.constant 0 : index
      %c0_33 = arith.constant 0 : index
      %47 = vector.load %arg9[%c0_32, %c0_33] : memref<16x1xf32, #tpu.memory_space<vmem>>, vector<16x1xf32>
      tpu.vector_store %arg9[%c0_32, %c0_33], %46 {strides = array<i32>} : memref<16x1xf32, #tpu.memory_space<vmem>>, vector<16x1xf32>,
    } else {
    }
    %c0 = arith.constant 0 : index
    %c0_1 = arith.constant 0 : index
    %3 = vector.load %arg2[%c0, %c0_1] : memref<16x128xbf16, #tpu.memory_space<vmem>>, vector<16x128xbf16>
    %c0_2 = arith.constant 0 : index
    %c0_3 = arith.constant 0 : index
    %4 = vector.load %arg3[%c0_2, %c0_3] : memref<128x256xbf16, #tpu.memory_space<vmem>>, vector<128x256xbf16>
    %cst = arith.constant dense<0.000000e+00> : vector<16x256xf32>
    %5 = tpu.matmul %3, %4, %cst {dimension_numbers = #tpu.dot_dimension_numbers<[1], [0], [0], [1], [0, 0, 1, 1], [], []>} : vector<16x128xbf16>, vector<128x256xbf16>, vector<16x256xf32> -> vector<16x256xf32>
    %c0_4 = arith.constant 0 : index
    %c0_5 = arith.constant 0 : index
    %6 = vector.load %arg4[%c0_4, %c0_5] : memref<1x256xf32, #tpu.memory_space<vmem>>, vector<1x256xf32>
    %7 = vector.broadcast %6 : vector<1x256xf32> to vector<16x256xf32>
    %8 = arith.addf %5, %7 : vector<16x256xf32>
    %c0_6 = arith.constant 0 : index
    %c0_7 = arith.constant 0 : index
    %9 = vector.load %arg5[%c0_6, %c0_7] : memref<16x1xi32, #tpu.memory_space<vmem>>, vector<16x1xi32>
    %c0_8 = arith.constant 0 : index
    %c0_9 = arith.constant 0 : index
    %10 = vector.load %arg7[%c0_8, %c0_9] : memref<16x1xf32, #tpu.memory_space<vmem>>, vector<16x1xf32>
    %cst_10 = arith.constant dense<0xFF800000> : vector<16xf32>
    %11 = vector.multi_reduction <maximumf>, %8, %cst_10 [1] : vector<16x256xf32> to vector<16xf32>
    %12 = vector.shape_cast %11 : vector<16xf32> to vector<16x1xf32>
    %13 = arith.maximumf %10, %12 : vector<16x1xf32>
    %14 = arith.subf %10, %13 : vector<16x1xf32>
    %15 = math.exp %14 : vector<16x1xf32>
    %16 = vector.broadcast %13 : vector<16x1xf32> to vector<16x256xf32>
    %17 = arith.subf %8, %16 : vector<16x256xf32>
    %18 = math.exp %17 : vector<16x256xf32>
    %c0_11 = arith.constant 0 : index
    %c0_12 = arith.constant 0 : index
    %19 = vector.load %arg8[%c0_11, %c0_12] : memref<16x1xf32, #tpu.memory_space<vmem>>, vector<16x1xf32>
    %20 = arith.mulf %15, %19 : vector<16x1xf32>
    %cst_13 = arith.constant dense<0.000000e+00> : vector<16xf32>
    %21 = vector.multi_reduction <add>, %18, %cst_13 [1] : vector<16x256xf32> to vector<16xf32>
    %22 = vector.shape_cast %21 : vector<16xf32> to vector<16x1xf32>
    %23 = arith.addf %20, %22 : vector<16x1xf32>
    %c0_14 = arith.constant 0 : index
    %c0_15 = arith.constant 0 : index
    %24 = vector.load %arg8[%c0_14, %c0_15] : memref<16x1xf32, #tpu.memory_space<vmem>>, vector<16x1xf32>
    tpu.vector_store %arg8[%c0_14, %c0_15], %23 {strides = array<i32>} : memref<16x1xf32, #tpu.memory_space<vmem>>, vector<16x1xf32>,
    %c0_16 = arith.constant 0 : index
    %c0_17 = arith.constant 0 : index
    %25 = vector.load %arg7[%c0_16, %c0_17] : memref<16x1xf32, #tpu.memory_space<vmem>>, vector<16x1xf32>
    tpu.vector_store %arg7[%c0_16, %c0_17], %13 {strides = array<i32>} : memref<16x1xf32, #tpu.memory_space<vmem>>, vector<16x1xf32>,
    %c256_i32 = arith.constant 256 : i32
    %26 = arith.muli %arg1, %c256_i32 : i32
    %27 = tpu.iota {dimensions = array<i32: 1>} : vector<16x256xi32>
    %28 = vector.broadcast %26 : i32 to vector<16x256xi32>
    %29 = arith.addi %28, %27 : vector<16x256xi32>
    %c0_18 = arith.constant 0 : index
    %c0_19 = arith.constant 0 : index
    %30 = vector.load %arg9[%c0_18, %c0_19] : memref<16x1xf32, #tpu.memory_space<vmem>>, vector<16x1xf32>
    %31 = vector.broadcast %9 : vector<16x1xi32> to vector<16x256xi32>
    %32 = arith.cmpi eq, %29, %31 : vector<16x256xi32>
    %cst_20 = arith.constant 0.000000e+00 : f32
    %33 = vector.broadcast %cst_20 : f32 to vector<16x256xf32>
    %34 = arith.select %32, %8, %33 : vector<16x256xi1>, vector<16x256xf32>
    %cst_21 = arith.constant dense<0.000000e+00> : vector<16xf32>
    %35 = vector.multi_reduction <add>, %34, %cst_21 [1] : vector<16x256xf32> to vector<16xf32>
    %36 = vector.shape_cast %35 : vector<16xf32> to vector<16x1xf32>
    %37 = arith.addf %30, %36 : vector<16x1xf32>
    %c0_22 = arith.constant 0 : index
    %c0_23 = arith.constant 0 : index
    %38 = vector.load %arg9[%c0_22, %c0_23] : memref<16x1xf32, #tpu.memory_space<vmem>>, vector<16x1xf32>
    tpu.vector_store %arg9[%c0_22, %c0_23], %37 {strides = array<i32>} : memref<16x1xf32, #tpu.memory_space<vmem>>, vector<16x1xf32>,
    %c13_i32 = arith.constant 13 : i32
    %39 = arith.cmpi eq, %arg1, %c13_i32 : i32
    %40 = arith.extui %39 : i1 to i32
    %c0_i32_24 = arith.constant 0 : i32
    %41 = arith.cmpi ne, %40, %c0_i32_24 : i32
    scf.if %41 {
      %c0_25 = arith.constant 0 : index
      %c0_26 = arith.constant 0 : index
      %42 = vector.load %arg7[%c0_25, %c0_26] : memref<16x1xf32, #tpu.memory_space<vmem>>, vector<16x1xf32>
      %c0_27 = arith.constant 0 : index
      %c0_28 = arith.constant 0 : index
      %43 = vector.load %arg8[%c0_27, %c0_28] : memref<16x1xf32, #tpu.memory_space<vmem>>, vector<16x1xf32>
      %44 = math.log %43 : vector<16x1xf32>
      %45 = arith.addf %42, %44 : vector<16x1xf32>
      %c0_i32_29 = arith.constant 0 : i32
      %46 = vector.broadcast %c0_i32_29 : i32 to vector<16x1xi32>
      %47 = arith.cmpi ne, %9, %46 : vector<16x1xi32>
      %48 = arith.extui %47 : vector<16x1xi1> to vector<16x1xi32>
      %49 = arith.sitofp %48 : vector<16x1xi32> to vector<16x1xf32>
      %c0_30 = arith.constant 0 : index
      %c0_31 = arith.constant 0 : index
      %50 = vector.load %arg9[%c0_30, %c0_31] : memref<16x1xf32, #tpu.memory_space<vmem>>, vector<16x1xf32>
      %51 = arith.subf %45, %50 : vector<16x1xf32>
      %52 = arith.mulf %51, %49 : vector<16x1xf32>
      %c0_32 = arith.constant 0 : index
      %c0_33 = arith.constant 0 : index
      %53 = vector.load %arg6[%c0_32, %c0_33] : memref<16x1xf32, #tpu.memory_space<vmem>>, vector<16x1xf32>
      tpu.vector_store %arg6[%c0_32, %c0_33], %52 {strides = array<i32>} : memref<16x1xf32, #tpu.memory_space<vmem>>, vector<16x1xf32>,
    } else {
    }
    return
  }
  func.func @transform_0(%arg0: i32, %arg1: i32) -> (i32, i32) {
    %c0_i32 = arith.constant 0 : i32
    %c0_i32_0 = arith.constant 0 : i32
    return %arg0, %c0_i32 : i32, i32
  }
  func.func @transform_1(%arg0: i32, %arg1: i32) -> (i32, i32) {
    %c0_i32 = arith.constant 0 : i32
    %c0_i32_0 = arith.constant 0 : i32
    return %c0_i32, %arg1 : i32, i32
  }
  func.func @transform_2(%arg0: i32, %arg1: i32) -> (i32, i32) {
    %c0_i32 = arith.constant 0 : i32
    %c0_i32_0 = arith.constant 0 : i32
    return %c0_i32, %arg1 : i32, i32
  }
  func.func @transform_3(%arg0: i32, %arg1: i32) -> (i32, i32) {
    %c0_i32 = arith.constant 0 : i32
    %c0_i32_0 = arith.constant 0 : i32
    return %arg0, %c0_i32 : i32, i32
  }
  func.func @transform_4(%arg0: i32, %arg1: i32) -> (i32, i32) {
    %c0_i32 = arith.constant 0 : i32
    %c0_i32_0 = arith.constant 0 : i32
    return %arg0, %c0_i32 : i32, i32
  }
}

</mosaic_0001>

<bundles_post_ra>
// kernel: tpu_custom_call.1
= control target key start
LH: loop header
LB: loop body
LE: loop exit
PB: predicated region body
PF: predicated region fallthrough
CT: control target
= control target key end

     0   :  { %9 = vsyncpa [#allocation6], 0  ;;  %s1204_s0 = inlined_call_operand.vmem [shape: bf16[16,128], index: 0, kind: input, shape index: {}]   ;;  %s1205_s1 = inlined_call_operand.hbm [shape: bf16[128,3584], index: 1, kind: input, shape index: {}]   ;;  %s1206_s2 = inlined_call_operand.hbm [shape: f32[1,3584], index: 2, kind: input, shape index: {}]   ;;  %s1207_s3 = inlined_call_operand.vmem [shape: s32[16,1], index: 3, kind: input, shape index: {}]   ;;  %s1208_s4 = inlined_call_operand.vmem [shape: f32[16,1], index: 4, kind: output, shape index: {}]  }
   0x1   :  { %11 = vsyncpa [#allocation6 + $0x1], 0 }
   0x2   :  { %12 = vsyncpa [#allocation8], 0 }
   0x3   :  { %14 = vsyncpa [#allocation8 + $0x1], 0  ;;  %s1028_s15 = smov 0   ;;  %s1030_s16 = smov 0  }
   0x4   :  { %s1032_s17 = smov 0   ;;  %s1034_s18 = smov 0  }
   0x5   :  { %s1036_s19 = smov 0   ;;  %s1038_s20 = smov 0  }
   0x6 LB: > { %s730_s21 = sadd.s32 4294967295, %s992_s20   ;;  %s29_s22 = sadd.s32 1, %s988_s19  ;;  %s992_s20 = sphi %s1038_s20, %s20_s20   ;;  %s988_s19 = sphi %s1036_s19, %s1217_s19   ;;  %s984_s18 = sphi %s1034_s18, %s1216_s18   ;;  %s980_s17 = sphi %s1032_s17, %s1215_s17   ;;  %s976_s16 = sphi %s1030_s16, %s1214_s16   ;;  %s972_s15 = sphi %s1028_s15, %s1213_s15  }
   0x7   : > { %p30_p0 = scmp.ge.s32.totalorder %s29_s22, 14  ;;  %s65_s23 = sadd.s32 1, %s980_s17 }
   0x8   : > { %p72_p1 = scmp.ne.s32.totalorder %s980_s17, %s976_s16  ;;  %p73_p2 = scmp.eq.s32.totalorder %s992_s20, 0 }
   0x9   : > { %s1219_s22 = smov (%p30_p0, %s29_s22), 0  ;;  %p78_p4 = scmp.ne.s32.totalorder %s976_s16, %s972_s15 }
   0xa   : > { %p1064_p3 = por %p73_p2, %p72_p1  ;;  %s62_s25 = ssub.s32 %s988_s19, %s1219_s22 }
   0xb   : > { %p79_p5 = scmp.eq.s32.totalorder %s730_s21, 0  ;;  %p63_p6 = scmp.eq.s32.totalorder %s62_s25, 0 }
   0xc   : > { %p783_p8 = scmp.lt.s32.totalorder %s992_s20, 14  ;;  %s1080_s28 = sand.u32 1, %s980_s17  }
   0xd   : > { %p1071_p7 = por %p79_p5, %p78_p4  ;;  %s770_s29 = sshll.u32 %s988_s19, 7 }
   0xe   : > { %s1077_s27 = scalar_select %p63_p6, %s980_s17, %s65_s23  }
   0xf   : > { %s735_s30 = sshll.u32 %s1080_s28, 7  ;;  %s208_s7 = scalar_lea.hbm %s1205_s1, %s770_s29 }
  0x10   : > { %s202_s8 = scalar_lea.vmem [#allocation5], %s735_s30  ;;  %p1089_p9 = pnand %p783_p8, %p1064_p3 }
  0x11   : > { %s209_s9 = sshll.u32 %s202_s8, 4  ;;  %p741_p10 = scmp.ge.s32.totalorder %s992_s20, 1  ;;  %s210_s9 = int_to_ptr.vmem [resolvable:$true] %s209_s9 }
  0x12   : > { %s199_s11 = scalar_lea.sflag [#allocation6], %s1080_s28  ;;  %p884_p11 = pneg %p1089_p9 }
  0x13   : > { %s895_s12 = scalar_lea.vmem %s210_s9, 2048  ;;  %s994_s13 = smov [#allocation5]  }
  0x14   : > { %p896_p12 = scmp.ne.s32.totalorder %s210_s9, %s895_s12  ;;  %s900_s14 = sshll.u32 %s994_s13, 4  ;;  %s901_s14 = int_to_ptr.vmem [resolvable:$false] %s900_s14 }
  0x15   : > { %s902_s15 = scalar_lea.vmem %s901_s14, 4096  ;;  %p903_p1 = scmp.lt.s32.totalorder %s210_s9, %s901_s14 }
  0x16   : > { %p898_p13 = pnand %p896_p12, %p884_p11  ;;  %p904_p2 = scmp.lt.s32.totalorder %s902_s15, %s895_s12 }
  0x18   : > { %p899_p0 = pneg %p898_p13  ;;  %p905_p3 = por %p904_p2, %p903_p1 }
  0x1a   : > { %p906_p4 = pnand %p905_p3, %p899_p0 }
  0x1c   : > { %909 = shalt.err (!%p906_p4)
}
  0x1d   : > { %s995_s21 = smov 1792   ;;  %s996_s23 = smov 128  }
  0x1e   : > { %s997_s24 = smov 8   ;;  %p236_p5 = scmp.lt.s32.totalorder %s992_s20, 15 }
  0x1f   : > { %779 = dma.hbm_to_vmem [thread:$0]  (!%p1089_p9), %s208_s7, 2048, %s210_s9, %s199_s11, %s995_s21, %s996_s23, %s997_s24  }
  0x20   : > { %s738_s25 = sshll.u32 %s1080_s28, 1  ;;  %s771_s29 = sshll.u32 %s988_s19, 5 }
  0x21   : > { %p1107_p6 = pnand %p741_p10, %p236_p5  ;;  %s229_s8 = scalar_lea.hbm %s1206_s2, %s771_s29 }
  0x22   : > { %s223_s12 = scalar_lea.vmem [#allocation7], %s738_s25  ;;  %s220_s14 = scalar_lea.sflag [#allocation8], %s1080_s28 }
  0x23   : > { %s231_s13 = sshll.u32 %s223_s12, 4  ;;  %s998_s7 = smov [#allocation7]   ;;  %s232_s13 = int_to_ptr.vmem [resolvable:$true] %s231_s13 }
  0x24   : > { %s923_s15 = scalar_lea.vmem %s232_s13, 32  ;;  %s928_s9 = sshll.u32 %s998_s7, 4  ;;  %s929_s9 = int_to_ptr.vmem [resolvable:$false] %s928_s9 }
  0x25   : > { %p924_p8 = scmp.ne.s32.totalorder %s232_s13, %s923_s15  ;;  %s930_s11 = scalar_lea.vmem %s929_s9, 64 }
  0x26   : > { %p931_p10 = scmp.lt.s32.totalorder %s232_s13, %s929_s9  ;;  %p932_p0 = scmp.lt.s32.totalorder %s930_s11, %s923_s15 }
  0x27   : > { %p926_p12 = pnand %p924_p8, %p884_p11 }
  0x28   : > { %p933_p1 = por %p932_p0, %p931_p10 }
  0x29   : > { %p927_p13 = pneg %p926_p12 }
  0x2b   : > { %p934_p2 = pnand %p933_p1, %p927_p13 }
  0x2d   : > { %937 = shalt.err (!%p934_p2)
}
  0x2e   : > { %782 = dma.hbm_to_vmem [thread:$0]  (!%p1089_p9), %s229_s8, 32, %s232_s13, %s220_s14  }
  0x2f   : > { %240 = sbr.rel (%p1107_p6) target bundleno = 760 (0x2f8), region = 36  ;;  %s242_s28 = sand.u32 (!%p1107_p6), 1, %s976_s16  }
  0x30   : > { %s742_s21 = sshll.u32 (!%p1107_p6), %s242_s28, 7  ;;  %s243_s23 = scalar_lea.sflag (!%p1107_p6), [#allocation6], %s242_s28 }
  0x31   : > { %s1123_s24 = scalar_lea.vmem (!%p1107_p6), [#allocation5], %s742_s21 }
  0x34   : > { %963 = dma.done.wait (%p1071_p7), %s243_s23, 2048  }
  0x35   : > { %965 = vsyncadd (%p1071_p7), %s243_s23, 4294965248  ;;  %s743_s25 = sshll.u32 %s242_s28, 1  ;;  %s252_s29 = scalar_lea.sflag [#allocation8], %s242_s28 }
  0x36   : > { %s1129_s10 = scalar_lea.vmem [#allocation7], %s743_s25 }
  0x37   : > { %967 = dma.done.wait (%p1071_p7), %s252_s29, 32  }
  0x38   : > { %969 = vsyncadd (%p1071_p7), %s252_s29, 4294967264  ;;  %p744_p9 = scmp.ne.s32.totalorder %s984_s18, 0 }
  0x3a   : > { %319 = sbr.rel (%p744_p9) target bundleno = 67 (0x43), region = 48 }
  0x3f   : > { %vm320_vm0 = vcmask 7168   ;;  %v999_v0 = vmov -3e+38   ;;  %v1000_v1 = vmov 0.0  }
  0x40   : > { %321 = vst.msk [vmem:[#allocation2] sm:$0xff] %vm320_vm0, %v999_v0  ;;  %322 = vst.msk [vmem:[#allocation2 + $0x8] sm:$0xff] %vm320_vm0, %v999_v0 }
  0x41   : > { %323 = vst.msk [vmem:[#allocation3] sm:$0xff] %vm320_vm0, %v1000_v1  ;;  %324 = vst.msk [vmem:[#allocation3 + $0x8] sm:$0xff] %vm320_vm0, %v1000_v1 }
  0x42   : > { %325 = vst.msk [vmem:[#allocation4] sm:$0xff] %vm320_vm0, %v1000_v1  ;;  %326 = vst.msk [vmem:[#allocation4 + $0x8] sm:$0xff] %vm320_vm0, %v1000_v1 }
  0x43 PF: > { %v841_v2 = vld [vmem:[%s1123_s24 + $0x74] ss:$8 sps:$4 sm:$0xff]   ;;  %v843_v3 = vld [vmem:[%s1123_s24 + $0x70] ss:$8 sps:$4 sm:$0xff]   ;;  %v1001_v4 = vmov 0   ;;  %v347_v20 = vlaneseq  ;;  %vm538_vm1 = vcmask 7168  }
  0x44   : > { %475 = vmatprep.mubr.bf16.mxu0 %v1001_v4  ;;  %840 = vset.pattern.permute.xlu0 %v1001_v4  ;;  %v844_v5 = vld [vmem:[%s1123_s24 + $0x64] ss:$8 sps:$4 sm:$0xff]   ;;  %v846_v6 = vld [vmem:[%s1123_s24 + $0x60] ss:$8 sps:$4 sm:$0xff]   ;;  %v847_v7 = vld [vmem:[%s1123_s24 + $0x54] ss:$8 sps:$4 sm:$0xff]  }
  0x45   : > { %443 = vmatprep.subr.bf16.mxu0 %v841_v2  ;;  %839 = vset.pattern.permute.xlu1 %v1001_v4  ;;  %v849_v8 = vld [vmem:[%s1123_s24 + $0x50] ss:$8 sps:$4 sm:$0xff]   ;;  %v850_v9 = vld [vmem:[%s1123_s24 + $0x44] ss:$8 sps:$4 sm:$0xff]   ;;  %v852_v10 = vld [vmem:[%s1123_s24 + $0x40] ss:$8 sps:$4 sm:$0xff]  }
  0x46   : > { %444 = vmatpush1.bf16.msra.mxu0 %v843_v3  ;;  %v853_v11 = vld [vmem:[%s1123_s24 + $0x34] ss:$8 sps:$4 sm:$0xff]   ;;  %v855_v12 = vld [vmem:[%s1123_s24 + $0x30] ss:$8 sps:$4 sm:$0xff]   ;;  %v856_v13 = vld [vmem:[%s1123_s24 + $0x24] ss:$8 sps:$4 sm:$0xff]  }
  0x47   : > { %445 = vmatprep.subr.bf16.mxu0 %v844_v5  ;;  %v858_v14 = vld [vmem:[%s1123_s24 + $0x20] ss:$8 sps:$4 sm:$0xff]   ;;  %v859_v15 = vld [vmem:[%s1123_s24 + $0x14] ss:$8 sps:$4 sm:$0xff]   ;;  %v861_v16 = vld [vmem:[%s1123_s24 + $0x10] ss:$8 sps:$4 sm:$0xff]  }
  0x48   : > { %v862_v17 = vld [vmem:[%s1123_s24 + $0x4] ss:$8 sps:$4 sm:$0xff]   ;;  %v864_v18 = vld [vmem:[%s1123_s24] ss:$8 sps:$4 sm:$0xff]   ;;  %v865_v19 = vld [vmem:[%s1204_s0] sm:$0xff]   ;;  %v348_v21 = vshrl.u32 %v347_v20, 7 }
  0x49   : > { %v345_v24 = vld [vmem:[%s1129_s10] sm:$0x3]  ;;  %v1159_v37 = vld [vmem:[%s1207_s3] sm:$0xff]  ;;  %v545_v41 = vand.u32 127, %v347_v20  ;;  %v489_v42 = vld [vmem:[#allocation2 + $0x8] sm:$0xff]  ;;  %s762_s8 = sshll.u32 %s984_s18, 8 }
  0x4a   : > { %446 = vmatpush1.bf16.msra.mxu0 %v846_v6  ;;  %v349_v22 = vsub.s32 0, %v348_v21  ;;  %v353_v23 = vsub.s32 1, %v348_v21  ;;  %v488_v38 = vld [vmem:[#allocation2] sm:$0xff]  ;;  %v547_v47 = vstv %s762_s8  ;;  %v1168_v49 = vld [vmem:[%s1207_s3 + $0x8] sm:$0xff]  ;;  %p763_p7 = scmp.ne.s32.totalorder %s984_s18, 13 }
  0x4b   : > { %447 = vmatprep.subr.bf16.mxu0 %v847_v7  ;;  %v546_v46 = vadd.s32 128, %v545_v41  ;;  %v548_v50 = vadd.s32 %v547_v47, %v545_v41 }
  0x4c   : > { %v350_v25 = vrot.slane %v345_v24, %v349_v22  ;;  %v354_v26 = vrot.slane %v345_v24, %v353_v23  ;;  %v527_v22 = vld [vmem:[#allocation3 + $0x8] sm:$0xff] }
  0x4d   : > { %v549_v51 = vadd.s32 %v547_v47, %v546_v46 }
  0x4e   : > { %448 = vmatpush1.bf16.msra.mxu0 %v849_v8 }
  0x4f   : > { %449 = vmatprep.subr.bf16.mxu0 %v850_v9 }
  0x52   : > { %450 = vmatpush1.bf16.msra.mxu0 %v852_v10 }
  0x53   : > { %451 = vmatprep.subr.bf16.mxu0 %v853_v11  ;;  %v550_v11 = vld [vmem:[#allocation4] sm:$0xff] }
  0x56   : > { %452 = vmatpush1.bf16.msra.mxu0 %v855_v12 }
  0x57   : > { %453 = vmatprep.subr.bf16.mxu0 %v856_v13 }
  0x5a   : > { %454 = vmatpush1.bf16.msra.mxu0 %v858_v14 }
  0x5b   : > { %455 = vmatprep.subr.bf16.mxu0 %v859_v15 }
  0x5e   : > { %456 = vmatpush1.bf16.msra.mxu0 %v861_v16 }
  0x5f   : > { %457 = vmatprep.subr.bf16.mxu0 %v862_v17 }
  0x62   : > { %458 = vmatpush1.bf16.msra.mxu0 %v864_v18  ;;  %v526_v18 = vld [vmem:[#allocation3] sm:$0xff] }
  0x65   : > { %476 = vmatmul.mubr.bf16.vlgmr.msra.gmra.mxu0 %v865_v19 }
 0x125   : > { %v477_v27 = vpop.f32.mrf.mxu0 }
 0x126   : > { %v478_v29 = vadd.f32 %v477_v27, %v350_v25  ;;  %v551_v27 = vld [vmem:[#allocation4 + $0x8] sm:$0xff] }
 0x127   : > { %v479_v28 = vpop.f32.mrf.mxu0 }
 0x128   : > { %v480_v30 = vadd.f32 %v479_v28, %v354_v26 }
 0x129   : > { %v481_v31 = vpop.f32.mrf.mxu0 }
 0x12a   : > { %v490_v32 = vmax.f32 %v478_v29, %v480_v30  ;;  %v482_v34 = vadd.f32 %v481_v31, %v350_v25 }
 0x12b   : > { %v483_v33 = vpop.f32.mrf.mxu0 }
 0x12c   : > { %v484_v35 = vadd.f32 %v483_v33, %v354_v26  ;;  %491 = vmax.xlane.f32.xlu0 %v490_v32 }
 0x12e   : > { %v493_v36 = vmax.f32 %v482_v34, %v484_v35 }
 0x130   : > { %494 = vmax.xlane.f32.xlu0 %v493_v36 }
 0x146   : > { %553 = vperm.xlu0 %840, %v1159_v37  }
 0x1b5   : > { %v492_v39 = vpop.xlane.xlu0 %491 }
 0x1b6   : > { %v496_v40 = vmax.f32 %v488_v38, %v492_v39 }
 0x1b8   : > { %v498_v43 = vsub.f32 %v488_v38, %v496_v40  ;;  %541 = vst.msk [vmem:[#allocation2] sm:$0xff] %vm538_vm1, %v496_v40  ;;  %506 = vperm.xlu1 %839, %v496_v40  }
 0x1b9   : > { %v495_v44 = vpop.xlane.xlu0 %494 }
 0x1ba   : > { %v497_v45 = vmax.f32 %v489_v42, %v495_v44  ;;  %v500_v15 = vmul.f32 1.442695, %v498_v43 }
 0x1bc   : > { %v499_v48 = vsub.f32 %v489_v42, %v497_v45  ;;  %542 = vst.msk [vmem:[#allocation2 + $0x8] sm:$0xff] %vm538_vm1, %v497_v45  ;;  %511 = vperm.xlu1 %839, %v497_v45  }
 0x1be   : > { %v502_v16 = vmul.f32 1.442695, %v499_v48 }
 0x1c0   : > { %556 = vperm.xlu1 %839, %v1168_v49  }
 0x1c1   : > { %v554_v52 = vpop.permute.xlu0 %553 }
 0x1c2   : > { %vm558_vm2 = vcmp.eq.s32.totalorder %v548_v50, %v554_v52  ;;  %vm559_vm3 = vcmp.eq.s32.totalorder %v549_v51, %v554_v52 }
 0x1c3   : > { %v562_v53 = vsel %vm558_vm2, %v478_v29, 0.0  ;;  %v563_v54 = vsel %vm559_vm3, %v480_v30, 0.0 }
 0x1c4   : > { %v566_v55 = vadd.f32 %v563_v54, %v562_v53 }
 0x1c6   : > { %567 = vadd.xlane.f32.xlu0 %v566_v55 }
 0x233   : > { %v507_v56 = vpop.permute.xlu1 %506 }
 0x234   : > { %v514_v57 = vsub.f32 %v478_v29, %v507_v56  ;;  %v515_v58 = vsub.f32 %v480_v30, %v507_v56 }
 0x236   : > { %v518_v59 = vmul.f32 1.442695, %v514_v57  ;;  %v520_v60 = vmul.f32 1.442695, %v515_v58 }
 0x237   : > { %v512_v61 = vpop.permute.xlu1 %511 }
 0x238   : > { %866 = vpow2.f32 %v518_v59  ;;  %v516_v62 = vsub.f32 %v482_v34, %v512_v61  ;;  %v517_v63 = vsub.f32 %v484_v35, %v512_v61 }
 0x239   : > { %868 = vpow2.f32 %v520_v60 }
 0x23a   : > { %v522_v0 = vmul.f32 1.442695, %v516_v62  ;;  %v524_v1 = vmul.f32 1.442695, %v517_v63 }
 0x23b   : > { %v557_v4 = vpop.permute.xlu1 %556 }
 0x23c   : > { %870 = vpow2.f32 %v522_v0  ;;  %vm560_vm4 = vcmp.eq.s32.totalorder %v548_v50, %v557_v4  ;;  %vm561_vm5 = vcmp.eq.s32.totalorder %v549_v51, %v557_v4 }
 0x23d   : > { %872 = vpow2.f32 %v524_v1  ;;  %v564_v9 = vsel %vm560_vm4, %v482_v34, 0.0  ;;  %v565_v10 = vsel %vm561_vm5, %v484_v35, 0.0 }
 0x23e   : > { %v569_v13 = vadd.f32 %v565_v10, %v564_v9  ;;  %874 = vpow2.f32 %v500_v15 }
 0x23f   : > { %876 = vpow2.f32 %v502_v16 }
 0x245   : > { %v867_v2 = vpop.eup %866 }
 0x246   : > { %v869_v3 = vpop.eup %868 }
 0x247   : > { %v530_v5 = vadd.f32 %v869_v3, %v867_v2 }
 0x249   : > { %v871_v6 = vpop.eup %870  ;;  %531 = vadd.xlane.f32.xlu1 %v530_v5 }
 0x24a   : > { %v873_v7 = vpop.eup %872 }
 0x24b   : > { %v533_v8 = vadd.f32 %v873_v7, %v871_v6  ;;  %v875_v17 = vpop.eup %874 }
 0x24c   : > { %v528_v19 = vmul.f32 %v875_v17, %v526_v18  ;;  %v877_v20 = vpop.eup %876 }
 0x24d   : > { %534 = vadd.xlane.f32.xlu1 %v533_v8  ;;  %v529_v24 = vmul.f32 %v877_v20, %v527_v22 }
 0x24f   : > { %v568_v12 = vpop.xlane.xlu0 %567 }
 0x250   : > { %v572_v14 = vadd.f32 %v568_v12, %v550_v11 }
 0x251   : > { %570 = vadd.xlane.f32.xlu1 %v569_v13 }
 0x252   : > { %574 = vst.msk [vmem:[#allocation4] sm:$0xff] %vm538_vm1, %v572_v14 }
 0x2d2   : > { %v532_v21 = vpop.xlane.xlu1 %531 }
 0x2d3   : > { %v536_v23 = vadd.f32 %v532_v21, %v528_v19 }
 0x2d5   : > { %539 = vst.msk [vmem:[#allocation3] sm:$0xff] %vm538_vm1, %v536_v23 }
 0x2d6   : > { %v535_v25 = vpop.xlane.xlu1 %534 }
 0x2d7   : > { %v537_v26 = vadd.f32 %v535_v25, %v529_v24 }
 0x2d9   : > { %540 = vst.msk [vmem:[#allocation3 + $0x8] sm:$0xff] %vm538_vm1, %v537_v26  ;;  %579 = sbr.rel (%p763_p7) target bundleno = 760 (0x2f8), region = 52 }
 0x2da   : > { %v571_v28 = vpop.xlane.xlu1 %570 }
 0x2db   : > { %v573_v29 = vadd.f32 %v571_v28, %v551_v27 }
 0x2dd   : > { %575 = vst.msk [vmem:[#allocation4 + $0x8] sm:$0xff] %vm538_vm1, %v573_v29 }
 0x2de   : > { %v582_v30 = vld [vmem:[#allocation3] sm:$0xff]  ;;  %v580_v33 = vld [vmem:[#allocation2] sm:$0xff]  ;;  %vm590_vm6 = vcmp.ne.s32.totalorder %v1159_v37, 0  ;;  %v581_v36 = vld [vmem:[#allocation2 + $0x8] sm:$0xff]  ;;  %vm591_vm7 = vcmp.ne.s32.totalorder %v1168_v49, 0  ;;  %v1002_v42 = vmov 0.0  }
 0x2df   : > { %878 = vlog2.f32 %v582_v30  ;;  %v596_v38 = vld [vmem:[#allocation4] sm:$0xff]  ;;  %v764_v43 = vsel %vm590_vm6, 1.0, %v1002_v42  ;;  %v765_v46 = vsel %vm591_vm7, 1.0, %v1002_v42 }
 0x2e0   : > { %v583_v31 = vld [vmem:[#allocation3 + $0x8] sm:$0xff] }
 0x2e1   : > { %880 = vlog2.f32 %v583_v31 }
 0x2e4   : > { %v597_v41 = vld [vmem:[#allocation4 + $0x8] sm:$0xff] }
 0x2ec   : > { %v879_v32 = vpop.eup %878 }
 0x2ed   : > { %v585_v35 = vmul.f32 0.6931472, %v879_v32 }
 0x2ee   : > { %v881_v34 = vpop.eup %880 }
 0x2ef   : > { %v587_v39 = vmul.f32 0.6931472, %v881_v34  ;;  %v588_v40 = vadd.f32 %v585_v35, %v580_v33 }
 0x2f1   : > { %v589_v44 = vadd.f32 %v587_v39, %v581_v36  ;;  %v598_v45 = vsub.f32 %v588_v40, %v596_v38 }
 0x2f3   : > { %v599_v47 = vsub.f32 %v589_v44, %v597_v41  ;;  %v600_v48 = vmul.f32 %v764_v43, %v598_v45 }
 0x2f5   : > { %v601_v50 = vmul.f32 %v765_v46, %v599_v47  ;;  %602 = vst.msk [vmem:[%s1208_s4] sm:$0xff] %vm538_vm1, %v600_v48 }
 0x2f7   : > { %603 = vst.msk [vmem:[%s1208_s4 + $0x8] sm:$0xff] %vm538_vm1, %v601_v50 }
 0x2f8 PF: > { %s20_s20 = sadd.s32 1, %s992_s20   ;;  %s1213_s15 = smov %s976_s16 }
 0x2f9   : > { %p17_p11 = scmp.ge.s32.totalorder %s20_s20, 16   ;;  %s1214_s16 = smov %s980_s17 }
 0x2fa   : > { %s1215_s17 = smov %s1077_s27  ;;  %s1216_s18 = smov %s988_s19 }
 0x2fb   : > { %s1217_s19 = smov %s1219_s22  ;;  %19 = sbr.rel (!%p17_p11) target bundleno = 6 (0x6), region = 103 }
 0x300   :  { %626 = vsyncpa [#allocation6], 1 }
 0x301   :  { %628 = vsyncpa [#allocation6 + $0x1], 1 }
 0x302   :  { %629 = vsyncpa [#allocation8], 1 }
 0x303   :  { %631 = vsyncpa [#allocation8 + $0x1], 1 }

</bundles_post_ra>
